<compile_context>
chip_gen: v6e
topology: v6e:2x2x1
jax: 0.10.0
libtpu: 0.0.40
codegen_flags: <defaults>
</compile_context>

<pallas_src>
import functools

import jax
import jax.numpy as jnp
from jax.experimental import pallas as pl
from jax.experimental.pallas import tpu as pltpu

BN_EPS = 1e-5
_F32B = 4

# Single-buffer resident (constant index_map) operands when supported.
_RESIDENT_KW = {"pipeline_mode": pl.Buffered(1)} if hasattr(pl, "Buffered") else {}


def _round_up(n, m):
    return (n + m - 1) // m * m


def _vmem_capacity_bytes():
    """Per-core VMEM capacity; conservative (v7x) fallback if unavailable."""
    try:
        cap = getattr(pltpu.get_tpu_info(), "vmem_capacity_bytes", None)
        if cap:
            return int(cap)
    except Exception:
        pass
    return 64 << 20


def _pooler_kernel(x_ref, w1_ref, b1_ref, w2_ref, b2_ref, o_ref, acc_ref):
    # x_ref:   [TB, TK]               (streamed over k)
    # w1_ref:  [TK, hidden_pad]       (streamed over k, BN already folded in)
    # b1_ref:  [1, hidden_pad]        (resident, BN-folded bias)
    # w2_ref:  [hidden_pad, dim_pad]  (resident)
    # b2_ref:  [1, dim_pad]           (resident)
    # o_ref:   [TB, dim_pad]
    # acc_ref: [TB, hidden_pad] f32 scratch accumulator for the first GEMM
    k = pl.program_id(1)

    partial = jnp.dot(x_ref[...], w1_ref[...],
                      preferred_element_type=jnp.float32,
                      precision=jax.lax.Precision.HIGHEST)

    @pl.when(k == 0)
    def _():
        acc_ref[...] = partial          # direct store: no zero-fill pass

    @pl.when(k > 0)
    def _():
        acc_ref[...] += partial

    @pl.when(k == pl.num_programs(1) - 1)
    def _():
        # BN-folded bias + ReLU in place, then second linear (dropout p=0).
        acc_ref[...] = jnp.maximum(acc_ref[...] + b1_ref[...], 0.0)
        o_ref[...] = (jnp.dot(acc_ref[...], w2_ref[...],
                              preferred_element_type=jnp.float32,
                              precision=jax.lax.Precision.HIGHEST)
                      + b2_ref[...]).astype(o_ref.dtype)


def prepare_pooler(params):
    """One-time (per model) preprocessing, hoisted out of the per-call path.

    Folds eval-mode BatchNorm (+ first bias) into the first linear and pads
    the weights to lane-friendly sizes once, so pooler_head() never touches
    the big nf x hidden matrix on the host path again.
    """
    w1, b1, gamma, beta, mean, var, w2, b2 = params
    nf, hidden = w1.shape
    dim = w2.shape[1]

    scale = gamma * jax.lax.rsqrt(var + BN_EPS)          # [1, hidden]
    w1f = w1 * scale                                     # [nf, hidden]
    b1f = (b1 - mean) * scale + beta                     # [1, hidden]

    nf_pad = _round_up(nf, 128)
    hidden_pad = _round_up(hidden, 128)
    dim_pad = _round_up(dim, 128)

    w1p = jnp.pad(w1f, ((0, nf_pad - nf), (0, hidden_pad - hidden)))
    b1p = jnp.pad(b1f, ((0, 0), (0, hidden_pad - hidden)))
    w2p = jnp.pad(w2, ((0, hidden_pad - hidden), (0, dim_pad - dim)))
    b2p = jnp.pad(b2, ((0, 0), (0, dim_pad - dim)))
    # TODO(synk): optionally cast w1p (and x) to bf16 here for ~2x less HBM
    # traffic on this bandwidth-bound kernel when a relaxed tolerance is OK.
    return dict(w1=w1p, b1=b1p, w2=w2p, b2=b2p, nf=nf, hidden=hidden, dim=dim)


@functools.partial(jax.jit, static_argnames=("dim",))
def _pooler_apply(x, w1p, b1p, w2p, b2p, *, dim):
    B = x.shape[0]
    x2d = x.reshape(B, -1)                       # torch Flatten(start_dim=-2)
    nf = x2d.shape[1]
    nf_pad, hidden_pad = w1p.shape
    dim_pad = w2p.shape[1]

    # ---- Generation-aware tile sizing (fits v7x 64 MiB, uses v5e/v6e 128 MiB)
    cap = _vmem_capacity_bytes()
    budget = int(cap * 0.80)
    res_fac = 1 if _RESIDENT_KW else 2           # single- vs double-buffered residents
    resident = res_fac * (hidden_pad * dim_pad + 8 * hidden_pad + 8 * dim_pad) * _F32B

    # Grow TB before adding batch tiles (each batch tile re-streams all of w1).
    TB = min(512, _round_up(B, 8))
    while TB > 8:
        acc_b = TB * hidden_pad * _F32B
        out_b = 2 * TB * dim_pad * _F32B
        per_tk = 2 * (TB + hidden_pad) * _F32B
        if budget - resident - acc_b - out_b >= 128 * per_tk:
            break
        TB = max(8, _round_up(TB // 2, 8))
    acc_b = TB * hidden_pad * _F32B
    out_b = 2 * TB * dim_pad * _F32B
    per_tk = 2 * (TB + hidden_pad) * _F32B

    tk_budget = max((budget - resident - acc_b - out_b) // per_tk, 128)
    tk_cap = int(min(tk_budget, nf_pad))
    tk_cap = max(128, tk_cap - tk_cap % 128)
    TK = 128
    for cand in range(tk_cap, 127, -128):        # largest 128-multiple dividing nf_pad
        if nf_pad % cand == 0:
            TK = cand
            break

    # ---- Pad x only when actually needed (nf is often already a 128-multiple)
    B_pad = _round_up(B, TB)
    if (B_pad, nf_pad) != (B, nf):
        x2d = jnp.pad(x2d, ((0, B_pad - B), (0, nf_pad - nf)))

    grid = (B_pad // TB, nf_pad // TK)
    n_batch_tiles = grid[0]

    needed = (resident + acc_b + out_b
              + 2 * (TB * TK + TK * hidden_pad) * _F32B)
    vmem_limit = int(min(max(needed + (8 << 20), 32 << 20), cap - (2 << 20)))

    cost = pl.CostEstimate(
        flops=2 * B_pad * nf_pad * hidden_pad + 2 * B_pad * hidden_pad * dim_pad,
        bytes_accessed=_F32B * (B_pad * nf_pad
                                + n_batch_tiles * nf_pad * hidden_pad  # w1 re-streamed
                                + hidden_pad * dim_pad
                                + B_pad * dim_pad
                                + 2 * hidden_pad + dim_pad),
        transcendentals=0)

    grid_spec = pltpu.PrefetchScalarGridSpec(
        num_scalar_prefetch=0,
        grid=grid,
        in_specs=[
            pl.BlockSpec((TB, TK), lambda i, k: (i, k)),                  # x
            pl.BlockSpec((TK, hidden_pad), lambda i, k: (k, 0)),          # w1'
            pl.BlockSpec((1, hidden_pad), lambda i, k: (0, 0),
                         **_RESIDENT_KW),                                 # b1'
            pl.BlockSpec((hidden_pad, dim_pad), lambda i, k: (0, 0),
                         **_RESIDENT_KW),                                 # w2
            pl.BlockSpec((1, dim_pad), lambda i, k: (0, 0),
                         **_RESIDENT_KW),                                 # b2
        ],
        out_specs=pl.BlockSpec((TB, dim_pad), lambda i, k: (i, 0)),
        scratch_shapes=[pltpu.VMEM((TB, hidden_pad), jnp.float32)],
    )

    out_pad = pl.pallas_call(
        _pooler_kernel,
        out_shape=jax.ShapeDtypeStruct((B_pad, dim_pad), jnp.float32),
        grid_spec=grid_spec,
        compiler_params=pltpu.CompilerParams(
            dimension_semantics=("parallel", "arbitrary"),
            vmem_limit_bytes=vmem_limit),
        cost_estimate=cost,
    )(x2d, w1p, b1p, w2p, b2p)

    return out_pad[:B, :dim]


def pooler_head(x, prepared):
    """x: [B, D, P] float32 -> [B, dimension] float32 (eval-mode Pooler_Head)."""
    return _pooler_apply(x, prepared["w1"], prepared["b1"],
                         prepared["w2"], prepared["b2"],
                         dim=prepared["dim"])


def init_params(key, nf, dimension=128):
    hidden = nf // 2
    ks = jax.random.split(key, 6)
    scale1 = 1.0 / jnp.sqrt(nf)
    scale2 = 1.0 / jnp.sqrt(hidden)
    w1 = jax.random.uniform(ks[0], (nf, hidden), jnp.float32, -scale1, scale1)
    b1 = jax.random.uniform(ks[1], (1, hidden), jnp.float32, -scale1, scale1)
    w2 = jax.random.uniform(ks[2], (hidden, dimension), jnp.float32, -scale2, scale2)
    b2 = jax.random.uniform(ks[3], (1, dimension), jnp.float32, -scale2, scale2)
    # BatchNorm1d eval-mode params: non-trivial deterministic values.
    gamma = 1.0 + 0.1 * jax.random.normal(ks[4], (1, hidden), jnp.float32)
    beta = 0.1 * jax.random.normal(ks[5], (1, hidden), jnp.float32)
    mean = 0.05 * jnp.arange(hidden, dtype=jnp.float32).reshape(1, hidden) / hidden
    var = 1.0 + 0.01 * jnp.arange(hidden, dtype=jnp.float32).reshape(1, hidden)
    return (w1, b1, gamma, beta, mean, var, w2, b2)


def pooler_head_ref(x, params):
    """Pure-JAX reference matching the PyTorch module (eval mode)."""
    w1, b1, gamma, beta, mean, var, w2, b2 = params
    B = x.shape[0]
    h = x.reshape(B, -1) @ w1 + b1
    h = (h - mean) / jnp.sqrt(var + BN_EPS) * gamma + beta
    h = jnp.maximum(h, 0.0)
    return h @ w2 + b2


if __name__ == "__main__":
    # bs=2, n_vars=4 -> B = bs*n_vars = 8 rows; d_model=16, patch_num=8 -> nf=128
    B, D, P = 8, 16, 8
    nf = D * P
    dimension = 128

    key = jax.random.PRNGKey(0)
    kx, kp = jax.random.split(key)
    x = jax.random.normal(kx, (B, D, P), jnp.float32)
    params = init_params(kp, nf, dimension)

    prepared = prepare_pooler(params)            # one-time BN fold + pad
    out = pooler_head(x, prepared)
    out = jax.block_until_ready(out)

    ref = pooler_head_ref(x, params)
    assert out.shape == (B, dimension), out.shape
    assert jnp.allclose(out, ref, atol=1e-4, rtol=1e-4), "mismatch vs reference"

    print("KERNEL_OK")
</pallas_src>

<mosaic_0001>
module attributes {stable_mosaic.version = 11 : i64} {
  func.func @_pooler_kernel(%arg0: i32, %arg1: i32, %arg2: memref<8x128xf32, #tpu.memory_space<vmem>>, %arg3: memref<128x128xf32, #tpu.memory_space<vmem>>, %arg4: memref<1x128xf32, #tpu.memory_space<vmem>>, %arg5: memref<128x128xf32, #tpu.memory_space<vmem>>, %arg6: memref<1x128xf32, #tpu.memory_space<vmem>>, %arg7: memref<8x128xf32, #tpu.memory_space<vmem>>, %arg8: memref<8x128xf32, #tpu.memory_space<vmem>>) attributes {dimension_semantics = [#tpu.dimension_semantics<parallel>, #tpu.dimension_semantics<arbitrary>], iteration_bounds = array<i64: 1, 1>, scalar_prefetch = 0 : i64, scratch_operands = 1 : i64, tpu.core_type = #tpu.core_type<tc>, window_params = [{transform_indices = @transform_0, window_bounds = array<i64: 8, 128>}, {transform_indices = @transform_1, window_bounds = array<i64: 128, 128>}, {pipeline_mode = #tpu.pipeline_mode<synchronous>, transform_indices = @transform_2, window_bounds = array<i64: 1, 128>}, {pipeline_mode = #tpu.pipeline_mode<synchronous>, transform_indices = @transform_3, window_bounds = array<i64: 128, 128>}, {pipeline_mode = #tpu.pipeline_mode<synchronous>, transform_indices = @transform_4, window_bounds = array<i64: 1, 128>}, {transform_indices = @transform_5, window_bounds = array<i64: 8, 128>}]} {
    %c0 = arith.constant 0 : index
    %c0_0 = arith.constant 0 : index
    %0 = vector.load %arg2[%c0, %c0_0] : memref<8x128xf32, #tpu.memory_space<vmem>>, vector<8x128xf32>
    %c0_1 = arith.constant 0 : index
    %c0_2 = arith.constant 0 : index
    %1 = vector.load %arg3[%c0_1, %c0_2] : memref<128x128xf32, #tpu.memory_space<vmem>>, vector<128x128xf32>
    %cst = arith.constant dense<0.000000e+00> : vector<8x128xf32>
    %2 = tpu.matmul %0, %1, %cst {dimension_numbers = #tpu.dot_dimension_numbers<[1], [0], [0], [1], [0, 0, 1, 1], [], []>, precision = #tpu.contract_precision<fp32>} : vector<8x128xf32>, vector<128x128xf32>, vector<8x128xf32> -> vector<8x128xf32>
    %c0_i32 = arith.constant 0 : i32
    %3 = arith.cmpi eq, %arg1, %c0_i32 : i32
    %4 = arith.extui %3 : i1 to i32
    %c0_i32_3 = arith.constant 0 : i32
    %5 = arith.cmpi ne, %4, %c0_i32_3 : i32
    scf.if %5 {
      %c0_8 = arith.constant 0 : index
      %c0_9 = arith.constant 0 : index
      %12 = vector.load %arg8[%c0_8, %c0_9] : memref<8x128xf32, #tpu.memory_space<vmem>>, vector<8x128xf32>
      tpu.vector_store %arg8[%c0_8, %c0_9], %2 {strides = array<i32>} : memref<8x128xf32, #tpu.memory_space<vmem>>, vector<8x128xf32>,
    } else {
    }
    %c0_i32_4 = arith.constant 0 : i32
    %6 = arith.cmpi sgt, %arg1, %c0_i32_4 : i32
    %7 = arith.extui %6 : i1 to i32
    %c0_i32_5 = arith.constant 0 : i32
    %8 = arith.cmpi ne, %7, %c0_i32_5 : i32
    scf.if %8 {
      %c0_8 = arith.constant 0 : index
      %c0_9 = arith.constant 0 : index
      %12 = vector.load %arg8[%c0_8, %c0_9] : memref<8x128xf32, #tpu.memory_space<vmem>>, vector<8x128xf32>
      %13 = arith.addf %12, %2 : vector<8x128xf32>
      %c0_10 = arith.constant 0 : index
      %c0_11 = arith.constant 0 : index
      %14 = vector.load %arg8[%c0_10, %c0_11] : memref<8x128xf32, #tpu.memory_space<vmem>>, vector<8x128xf32>
      tpu.vector_store %arg8[%c0_10, %c0_11], %13 {strides = array<i32>} : memref<8x128xf32, #tpu.memory_space<vmem>>, vector<8x128xf32>,
    } else {
    }
    %c0_i32_6 = arith.constant 0 : i32
    %9 = arith.cmpi eq, %arg1, %c0_i32_6 : i32
    %10 = arith.extui %9 : i1 to i32
    %c0_i32_7 = arith.constant 0 : i32
    %11 = arith.cmpi ne, %10, %c0_i32_7 : i32
    scf.if %11 {
      %c0_8 = arith.constant 0 : index
      %c0_9 = arith.constant 0 : index
      %12 = vector.load %arg8[%c0_8, %c0_9] : memref<8x128xf32, #tpu.memory_space<vmem>>, vector<8x128xf32>
      %c0_10 = arith.constant 0 : index
      %c0_11 = arith.constant 0 : index
      %13 = vector.load %arg4[%c0_10, %c0_11] : memref<1x128xf32, #tpu.memory_space<vmem>>, vector<1x128xf32>
      %14 = vector.broadcast %13 : vector<1x128xf32> to vector<8x128xf32>
      %15 = arith.addf %12, %14 : vector<8x128xf32>
      %cst_12 = arith.constant 0.000000e+00 : f32
      %16 = vector.broadcast %cst_12 : f32 to vector<8x128xf32>
      %17 = arith.maximumf %15, %16 : vector<8x128xf32>
      %c0_13 = arith.constant 0 : index
      %c0_14 = arith.constant 0 : index
      %18 = vector.load %arg8[%c0_13, %c0_14] : memref<8x128xf32, #tpu.memory_space<vmem>>, vector<8x128xf32>
      tpu.vector_store %arg8[%c0_13, %c0_14], %17 {strides = array<i32>} : memref<8x128xf32, #tpu.memory_space<vmem>>, vector<8x128xf32>,
      %c0_15 = arith.constant 0 : index
      %c0_16 = arith.constant 0 : index
      %19 = vector.load %arg8[%c0_15, %c0_16] : memref<8x128xf32, #tpu.memory_space<vmem>>, vector<8x128xf32>
      %c0_17 = arith.constant 0 : index
      %c0_18 = arith.constant 0 : index
      %20 = vector.load %arg5[%c0_17, %c0_18] : memref<128x128xf32, #tpu.memory_space<vmem>>, vector<128x128xf32>
      %cst_19 = arith.constant dense<0.000000e+00> : vector<8x128xf32>
      %21 = tpu.matmul %19, %20, %cst_19 {dimension_numbers = #tpu.dot_dimension_numbers<[1], [0], [0], [1], [0, 0, 1, 1], [], []>, precision = #tpu.contract_precision<fp32>} : vector<8x128xf32>, vector<128x128xf32>, vector<8x128xf32> -> vector<8x128xf32>
      %c0_20 = arith.constant 0 : index
      %c0_21 = arith.constant 0 : index
      %22 = vector.load %arg6[%c0_20, %c0_21] : memref<1x128xf32, #tpu.memory_space<vmem>>, vector<1x128xf32>
      %23 = vector.broadcast %22 : vector<1x128xf32> to vector<8x128xf32>
      %24 = arith.addf %21, %23 : vector<8x128xf32>
      %c0_22 = arith.constant 0 : index
      %c0_23 = arith.constant 0 : index
      %25 = vector.load %arg7[%c0_22, %c0_23] : memref<8x128xf32, #tpu.memory_space<vmem>>, vector<8x128xf32>
      tpu.vector_store %arg7[%c0_22, %c0_23], %24 {strides = array<i32>} : memref<8x128xf32, #tpu.memory_space<vmem>>, vector<8x128xf32>,
    } else {
    }
    return
  }
  func.func @transform_0(%arg0: i32, %arg1: i32) -> (i32, i32) {
    %c0_i32 = arith.constant 0 : i32
    return %arg0, %arg1 : i32, i32
  }
  func.func @transform_1(%arg0: i32, %arg1: i32) -> (i32, i32) {
    %c0_i32 = arith.constant 0 : i32
    %c0_i32_0 = arith.constant 0 : i32
    return %arg1, %c0_i32 : i32, i32
  }
  func.func @transform_2(%arg0: i32, %arg1: i32) -> (i32, i32) {
    %c0_i32 = arith.constant 0 : i32
    %c0_i32_0 = arith.constant 0 : i32
    %c0_i32_1 = arith.constant 0 : i32
    return %c0_i32, %c0_i32_0 : i32, i32
  }
  func.func @transform_3(%arg0: i32, %arg1: i32) -> (i32, i32) {
    %c0_i32 = arith.constant 0 : i32
    %c0_i32_0 = arith.constant 0 : i32
    %c0_i32_1 = arith.constant 0 : i32
    return %c0_i32, %c0_i32_0 : i32, i32
  }
  func.func @transform_4(%arg0: i32, %arg1: i32) -> (i32, i32) {
    %c0_i32 = arith.constant 0 : i32
    %c0_i32_0 = arith.constant 0 : i32
    %c0_i32_1 = arith.constant 0 : i32
    return %c0_i32, %c0_i32_0 : i32, i32
  }
  func.func @transform_5(%arg0: i32, %arg1: i32) -> (i32, i32) {
    %c0_i32 = arith.constant 0 : i32
    %c0_i32_0 = arith.constant 0 : i32
    return %arg0, %c0_i32 : i32, i32
  }
}

</mosaic_0001>

<bundles_post_ra>
// kernel: _pooler_apply.1
= control target key start
LH: loop header
LB: loop body
LE: loop exit
PB: predicated region body
PF: predicated region fallthrough
CT: control target
= control target key end

     0   :  { %v2036_v3 = vmov 0.0   ;;  %vm2037_vm0 = vmmov 0   ;;  %s2899_s0 = inlined_call_operand.vmem [shape: f32[8,128], index: 0, kind: input, shape index: {}]   ;;  %s2900_s1 = inlined_call_operand.vmem [shape: f32[128,128], index: 1, kind: input, shape index: {}]   ;;  %s2901_s2 = inlined_call_operand.vmem [shape: f32[1,128], index: 2, kind: input, shape index: {}]   ;;  %s2902_s3 = inlined_call_operand.vmem [shape: f32[128,128], index: 3, kind: input, shape index: {}]   ;;  %s2903_s4 = inlined_call_operand.vmem [shape: f32[1,128], index: 4, kind: input, shape index: {}]   ;;  %s2904_s5 = inlined_call_operand.hbm [shape: f32[8,128], index: 5, kind: output, shape index: {}]  }
   0x1   :  { %v37_v0 = vld [vmem:[%s2900_s1 + $0x78] sm:$0xff]  ;;  %v36_v1 = vld [vmem:[%s2900_s1 + $0x70] sm:$0xff]  ;;  %v35_v2 = vld [vmem:[%s2900_s1 + $0x68] sm:$0xff]  ;;  %1591 = vmatprep.subr.mxu0 %v2036_v3  ;;  %1626 = vmatprep.subr.mxu1 %v2036_v3 }
   0x2   :  { %v2079_v4 = vand.u32 4294901760, %v37_v0  ;;  %v2081_v5 = vand.u32 4294901760, %v36_v1  ;;  %v2083_v6 = vand.u32 4294901760, %v35_v2  ;;  %v34_v7 = vld [vmem:[%s2900_s1 + $0x60] sm:$0xff]  ;;  %v33_v8 = vld [vmem:[%s2900_s1 + $0x58] sm:$0xff]  ;;  %v32_v9 = vld [vmem:[%s2900_s1 + $0x50] sm:$0xff]  ;;  %1623 = vmatprep.mubr.msk.f32.mxu0 %vm2037_vm0, %v2036_v3  ;;  %1658 = vmatprep.mubr.msk.f32.mxu1 %vm2037_vm0, %v2036_v3 }
   0x3   :  { %v2095_v10 = vand.u32 4294901760, %v34_v7  ;;  %v2097_v11 = vand.u32 4294901760, %v33_v8  ;;  %v2099_v12 = vand.u32 4294901760, %v32_v9  ;;  %v31_v13 = vld [vmem:[%s2900_s1 + $0x48] sm:$0xff]  ;;  %v30_v14 = vld [vmem:[%s2900_s1 + $0x40] sm:$0xff]  ;;  %v29_v19 = vld [vmem:[%s2900_s1 + $0x38] sm:$0xff] }
   0x4   :  { %1592 = vmatpush3.msra.mxu0 %v2079_v4  ;;  %v2113_v15 = vsub.f32 %v37_v0, %v2079_v4  ;;  %v2116_v16 = vsub.f32 %v36_v1, %v2081_v5  ;;  %v2118_v17 = vand.u32 4294901760, %v31_v13  ;;  %v2121_v18 = vsub.f32 %v35_v2, %v2083_v6  ;;  %v28_v26 = vld [vmem:[%s2900_s1 + $0x30] sm:$0xff] }
   0x5   :  { %1593 = vmatprep.subr.mxu0 %v2036_v3  ;;  %v2128_v20 = vsub.f32 %v34_v7, %v2095_v10  ;;  %v2131_v21 = vsub.f32 %v33_v8, %v2097_v11  ;;  %v2137_v25 = vand.u32 4294901760, %v30_v14  ;;  %v2144_v28 = vand.u32 4294901760, %v29_v19 }
   0x6   :  { %1594 = vmatpush3.msra.mxu0 %v2081_v5  ;;  %v132_v22 = vand.u32 4294901760, %v2113_v15  ;;  %v139_v23 = vand.u32 4294901760, %v2116_v16  ;;  %v146_v24 = vand.u32 4294901760, %v2121_v18  ;;  %v2148_v30 = vsub.f32 %v32_v9, %v2099_v12 }
   0x7   :  { %1595 = vmatprep.subr.mxu0 %v2036_v3  ;;  %v153_v27 = vand.u32 4294901760, %v2128_v20  ;;  %v160_v29 = vand.u32 4294901760, %v2131_v21 }
   0x8   :  { %10 = vsyncpa [#allocation4], 0  ;;  %1596 = vmatpush3.msra.mxu0 %v2083_v6  ;;  %v133_v31 = vsub.f32 %v2113_v15, %v132_v22  ;;  %v140_v32 = vsub.f32 %v2116_v16, %v139_v23  ;;  %v147_v33 = vsub.f32 %v2121_v18, %v146_v24  ;;  %v2161_v34 = vsub.f32 %v31_v13, %v2118_v17  ;;  %v27_v36 = vld [vmem:[%s2900_s1 + $0x28] sm:$0xff]  ;;  %v26_v41 = vld [vmem:[%s2900_s1 + $0x20] sm:$0xff]  ;;  %s2038_s7 = smov [#allocation3]  }
   0x9   :  { %1597 = vmatprep.subr.mxu0 %v2036_v3  ;;  %v2164_v35 = vand.u32 4294901760, %v28_v26  ;;  %v154_v39 = vsub.f32 %v2128_v20, %v153_v27  ;;  %v167_v40 = vand.u32 4294901760, %v2148_v30  ;;  %v161_v42 = vsub.f32 %v2131_v21, %v160_v29  ;;  %v25_v49 = vld [vmem:[%s2900_s1 + $0x18] sm:$0xff]  ;;  %v21_v50 = vld [vmem:[%s2899_s0] sm:$0xff]  ;;  %v24_v54 = vld [vmem:[%s2900_s1 + $0x10] sm:$0xff]  ;;  %s1377_s8 = sshll.u32 %s2038_s7, 4  ;;  %s1378_s8 = int_to_ptr.vmem [resolvable:$true] %s1377_s8 }
   0xa   :  { %1598 = vmatpush3.msra.mxu0 %v2095_v10  ;;  %v134_v37 = vand.u32 4294901760, %v133_v31  ;;  %v141_v38 = vand.u32 4294901760, %v140_v32  ;;  %v2182_v43 = vsub.f32 %v30_v14, %v2137_v25  ;;  %v148_v44 = vand.u32 4294901760, %v147_v33  ;;  %v23_v60 = vld [vmem:[%s2900_s1 + $0x8] sm:$0xff]  ;;  %v22_v7 = vld [vmem:[%s2900_s1] sm:$0xff]  ;;  %s2014_s9 = scalar_lea.vmem %s1378_s8, 128  ;;  %p2019_p1 = scmp.lt.s32.totalorder %s1378_s8, %s1378_s8 }
   0xb   :  { %1599 = vmatprep.subr.mxu0 %v2036_v3  ;;  %v2185_v45 = vand.u32 4294901760, %v27_v36  ;;  %v174_v46 = vand.u32 4294901760, %v2161_v34  ;;  %v2189_v47 = vsub.f32 %v29_v19, %v2144_v28  ;;  %v2193_v48 = vand.u32 4294901760, %v26_v41  ;;  %p2015_p0 = scmp.ne.s32.totalorder %s1378_s8, %s2014_s9  ;;  %p2020_p2 = scmp.lt.s32.totalorder %s2014_s9, %s2014_s9 }
   0xc   :  { %1600 = vmatpush3.msra.mxu0 %v2097_v11  ;;  %1627 = vmatpush3.msra.mxu1 %v134_v37  ;;  %v155_v51 = vand.u32 4294901760, %v154_v39  ;;  %v168_v52 = vsub.f32 %v2148_v30, %v167_v40  ;;  %v181_v53 = vand.u32 4294901760, %v2182_v43  ;;  %v2210_v55 = vsub.f32 %v28_v26, %v2164_v35 }
   0xd   :  { %1601 = vmatprep.subr.mxu0 %v2036_v3  ;;  %1628 = vmatprep.subr.mxu1 %v2036_v3  ;;  %v162_v56 = vand.u32 4294901760, %v161_v42  ;;  %v188_v57 = vand.u32 4294901760, %v2189_v47  ;;  %v175_v58 = vsub.f32 %v2161_v34, %v174_v46  ;;  %v2219_v59 = vand.u32 4294901760, %v25_v49  ;;  %p2021_p3 = por %p2020_p2, %p2019_p1 }
   0xe   :  { %1602 = vmatpush3.msra.mxu0 %v2099_v12  ;;  %1629 = vmatpush3.msra.mxu1 %v141_v38  ;;  %v2225_v61 = vsub.f32 %v27_v36, %v2185_v45  ;;  %v2227_v62 = vand.u32 4294901760, %v21_v50  ;;  %v2231_v63 = vand.u32 4294901760, %v24_v54  ;;  %v169_v0 = vand.u32 4294901760, %v168_v52 }
   0xf   :  { %1603 = vmatprep.subr.mxu0 %v2036_v3  ;;  %1630 = vmatprep.subr.mxu1 %v2036_v3  ;;  %v182_v1 = vsub.f32 %v2182_v43, %v181_v53  ;;  %v195_v2 = vand.u32 4294901760, %v2210_v55  ;;  %v2242_v8 = vsub.f32 %v26_v41, %v2193_v48  ;;  %v189_v9 = vsub.f32 %v2189_v47, %v188_v57  ;;  %p2022_p4 = pnand %p2021_p3, %p2015_p0 }
  0x10   :  { %1604 = vmatpush3.msra.mxu0 %v2118_v17  ;;  %1631 = vmatpush3.msra.mxu1 %v148_v44  ;;  %v2249_v13 = vand.u32 4294901760, %v23_v60  ;;  %v176_v14 = vand.u32 4294901760, %v175_v58  ;;  %v202_v19 = vand.u32 4294901760, %v2225_v61  ;;  %v2254_v26 = vsub.f32 %v21_v50, %v2227_v62 }
  0x11   :  { %1605 = vmatprep.subr.mxu0 %v2036_v3  ;;  %1632 = vmatprep.subr.mxu1 %v2036_v3  ;;  %v2257_v31 = vsub.f32 %v25_v49, %v2219_v59  ;;  %v2261_v32 = vand.u32 4294901760, %v22_v7  ;;  %v183_v33 = vand.u32 4294901760, %v182_v1  ;;  %v196_v36 = vsub.f32 %v2210_v55, %v195_v2 }
  0x12   :  { %1606 = vmatpush3.msra.mxu0 %v2137_v25  ;;  %1633 = vmatpush3.msra.mxu1 %v155_v51  ;;  %v209_v37 = vand.u32 4294901760, %v2242_v8  ;;  %v2269_v38 = vsub.f32 %v24_v54, %v2231_v63  ;;  %v190_v39 = vand.u32 4294901760, %v189_v9  ;;  %v203_v41 = vsub.f32 %v2225_v61, %v202_v19 }
  0x13   :  { %1607 = vmatprep.subr.mxu0 %v2036_v3  ;;  %1634 = vmatprep.subr.mxu1 %v2036_v3  ;;  %v121_v42 = vand.u32 4294901760, %v2254_v26  ;;  %v216_v44 = vand.u32 4294901760, %v2257_v31  ;;  %v2280_v49 = vsub.f32 %v23_v60, %v2249_v13  ;;  %v197_v50 = vand.u32 4294901760, %v196_v36 }
  0x14   :  { %1608 = vmatpush3.msra.mxu0 %v2144_v28  ;;  %1635 = vmatpush3.msra.mxu1 %v162_v56  ;;  %v210_v51 = vsub.f32 %v2242_v8, %v209_v37  ;;  %v223_v52 = vand.u32 4294901760, %v2269_v38  ;;  %v2290_v54 = vsub.f32 %v22_v7, %v2261_v32  ;;  %v204_v56 = vand.u32 4294901760, %v203_v41 }
  0x15   :  { %1609 = vmatprep.subr.mxu0 %v2036_v3  ;;  %1636 = vmatprep.subr.mxu1 %v2036_v3  ;;  %v122_v58 = vsub.f32 %v2254_v26, %v121_v42  ;;  %v217_v60 = vsub.f32 %v2257_v31, %v216_v44 }
  0x16   :  { %1610 = vmatpush3.msra.mxu0 %v2164_v35  ;;  %1637 = vmatpush3.msra.mxu1 %v169_v0  ;;  %v230_v0 = vand.u32 4294901760, %v2280_v49  ;;  %v211_v1 = vand.u32 4294901760, %v210_v51  ;;  %v224_v7 = vsub.f32 %v2269_v38, %v223_v52  ;;  %v237_v9 = vand.u32 4294901760, %v2290_v54 }
  0x17   :  { %1611 = vmatprep.subr.mxu0 %v2036_v3  ;;  %1638 = vmatprep.subr.mxu1 %v2036_v3 }
  0x18   :  { %1612 = vmatpush3.msra.mxu0 %v2185_v45  ;;  %1639 = vmatpush3.msra.mxu1 %v176_v14  ;;  %v123_v14 = vand.u32 4294901760, %v122_v58  ;;  %v231_v36 = vsub.f32 %v2280_v49, %v230_v0  ;;  %v238_v41 = vsub.f32 %v2290_v54, %v237_v9 }
  0x19   :  { %1613 = vmatprep.subr.mxu0 %v2036_v3  ;;  %1640 = vmatprep.subr.mxu1 %v2036_v3 }
  0x1a   :  { %1614 = vmatpush3.msra.mxu0 %v2193_v48  ;;  %1641 = vmatpush3.msra.mxu1 %v183_v33  ;;  %v218_v33 = vand.u32 4294901760, %v217_v60  ;;  %v239_v51 = vand.u32 4294901760, %v238_v41 }
  0x1b   :  { %1615 = vmatprep.subr.mxu0 %v2036_v3  ;;  %1642 = vmatprep.subr.mxu1 %v2036_v3 }
  0x1c   :  { %1616 = vmatpush3.msra.mxu0 %v2219_v59  ;;  %1643 = vmatpush3.msra.mxu1 %v190_v39  ;;  %v225_v39 = vand.u32 4294901760, %v224_v7 }
  0x1d   :  { %1617 = vmatprep.subr.mxu0 %v2036_v3  ;;  %1644 = vmatprep.subr.mxu1 %v2036_v3 }
  0x1e   :  { %1618 = vmatpush3.msra.mxu0 %v2231_v63  ;;  %1645 = vmatpush3.msra.mxu1 %v197_v50  ;;  %v232_v50 = vand.u32 4294901760, %v231_v36 }
  0x1f   :  { %1619 = vmatprep.subr.mxu0 %v2036_v3  ;;  %1646 = vmatprep.subr.mxu1 %v2036_v3 }
  0x20   :  { %1620 = vmatpush3.msra.mxu0 %v2249_v13  ;;  %1647 = vmatpush3.msra.mxu1 %v204_v56 }
  0x21   :  { %1621 = vmatprep.subr.mxu0 %v2036_v3  ;;  %1648 = vmatprep.subr.mxu1 %v2036_v3 }
  0x22   :  { %1622 = vmatpush3.msra.mxu0 %v2261_v32  ;;  %1649 = vmatpush3.msra.mxu1 %v211_v1 }
  0x23   :  { %1650 = vmatprep.subr.mxu1 %v2036_v3  ;;  %1661 = vmatprep.subr.mxu0 %v2036_v3 }
  0x24   :  { %1624 = vmatmul.mubr.f32.vlgmr.msra.gmra.mxu0 %v123_v14  ;;  %1651 = vmatpush3.msra.mxu1 %v218_v33  ;;  %v710_v33 = vld [vmem:[%s2902_s3 + $0x20] sm:$0xff] }
  0x25   :  { %1662 = vmatpush3.msra.mxu0 %v2113_v15  ;;  %1652 = vmatprep.subr.mxu1 %v2036_v3 }
  0x26   :  { %1663 = vmatprep.subr.mxu0 %v2036_v3  ;;  %1653 = vmatpush3.msra.mxu1 %v225_v39 }
  0x27   :  { %1664 = vmatpush3.msra.mxu0 %v2116_v16  ;;  %1654 = vmatprep.subr.mxu1 %v2036_v3 }
  0x28   :  { %1665 = vmatprep.subr.mxu0 %v2036_v3  ;;  %1655 = vmatpush3.msra.mxu1 %v232_v50  ;;  %v2643_v50 = vand.u32 4294901760, %v710_v33 }
  0x29   :  { %1666 = vmatpush3.msra.mxu0 %v2121_v18  ;;  %1656 = vmatprep.subr.mxu1 %v2036_v3  ;;  %v717_v18 = vld [vmem:[%s2902_s3 + $0x58] sm:$0xff] }
  0x2a   :  { %1667 = vmatprep.subr.mxu0 %v2036_v3  ;;  %1657 = vmatpush3.msra.mxu1 %v239_v51  ;;  %v709_v51 = vld [vmem:[%s2902_s3 + $0x18] sm:$0xff] }
  0x2b   :  { %1668 = vmatpush3.msra.mxu0 %v2128_v20  ;;  %1659 = vmatmul.mubr.f32.vlgmr.msra.gmra.mxu1 %v2227_v62  ;;  %v716_v20 = vld [vmem:[%s2902_s3 + $0x50] sm:$0xff] }
  0x2c   :  { %1669 = vmatprep.subr.mxu0 %v2036_v3  ;;  %1696 = vmatprep.subr.mxu1 %v2036_v3 }
  0x2d   :  { %1670 = vmatpush3.msra.mxu0 %v2131_v21  ;;  %1697 = vmatpush3.msra.mxu1 %v2079_v4  ;;  %v715_v21 = vld [vmem:[%s2902_s3 + $0x48] sm:$0xff] }
  0x2e   :  { %1671 = vmatprep.subr.mxu0 %v2036_v3  ;;  %1698 = vmatprep.subr.mxu1 %v2036_v3 }
  0x2f   :  { %1672 = vmatpush3.msra.mxu0 %v2148_v30  ;;  %1699 = vmatpush3.msra.mxu1 %v2081_v5 }
  0x30   :  { %1673 = vmatprep.subr.mxu0 %v2036_v3  ;;  %1700 = vmatprep.subr.mxu1 %v2036_v3 }
  0x31   :  { %1674 = vmatpush3.msra.mxu0 %v2161_v34  ;;  %1701 = vmatpush3.msra.mxu1 %v2083_v6 }
  0x32   :  { %1675 = vmatprep.subr.mxu0 %v2036_v3  ;;  %1702 = vmatprep.subr.mxu1 %v2036_v3 }
  0x33   :  { %1676 = vmatpush3.msra.mxu0 %v2182_v43  ;;  %1703 = vmatpush3.msra.mxu1 %v2095_v10 }
  0x34   :  { %1677 = vmatprep.subr.mxu0 %v2036_v3  ;;  %1704 = vmatprep.subr.mxu1 %v2036_v3 }
  0x35   :  { %1678 = vmatpush3.msra.mxu0 %v2189_v47  ;;  %1705 = vmatpush3.msra.mxu1 %v2097_v11 }
  0x36   :  { %1679 = vmatprep.subr.mxu0 %v2036_v3  ;;  %1706 = vmatprep.subr.mxu1 %v2036_v3 }
  0x37   :  { %1680 = vmatpush3.msra.mxu0 %v2210_v55  ;;  %1707 = vmatpush3.msra.mxu1 %v2099_v12 }
  0x38   :  { %1681 = vmatprep.subr.mxu0 %v2036_v3  ;;  %1708 = vmatprep.subr.mxu1 %v2036_v3 }
  0x39   :  { %1682 = vmatpush3.msra.mxu0 %v2225_v61  ;;  %1709 = vmatpush3.msra.mxu1 %v2118_v17 }
  0x3a   :  { %1683 = vmatprep.subr.mxu0 %v2036_v3  ;;  %1710 = vmatprep.subr.mxu1 %v2036_v3 }
  0x3b   :  { %1684 = vmatpush3.msra.mxu0 %v2242_v8  ;;  %1711 = vmatpush3.msra.mxu1 %v2137_v25 }
  0x3c   :  { %1685 = vmatprep.subr.mxu0 %v2036_v3  ;;  %1712 = vmatprep.subr.mxu1 %v2036_v3 }
  0x3d   :  { %1686 = vmatpush3.msra.mxu0 %v2257_v31  ;;  %1713 = vmatpush3.msra.mxu1 %v2144_v28 }
  0x3e   :  { %1687 = vmatprep.subr.mxu0 %v2036_v3  ;;  %1714 = vmatprep.subr.mxu1 %v2036_v3 }
  0x3f   :  { %1688 = vmatpush3.msra.mxu0 %v2269_v38  ;;  %1715 = vmatpush3.msra.mxu1 %v2164_v35 }
  0x40   :  { %1689 = vmatprep.subr.mxu0 %v2036_v3  ;;  %1716 = vmatprep.subr.mxu1 %v2036_v3 }
  0x41   :  { %1690 = vmatpush3.msra.mxu0 %v2280_v49  ;;  %1717 = vmatpush3.msra.mxu1 %v2185_v45 }
  0x42   :  { %1691 = vmatprep.subr.mxu0 %v2036_v3  ;;  %1718 = vmatprep.subr.mxu1 %v2036_v3 }
  0x43   :  { %1692 = vmatpush3.msra.mxu0 %v2290_v54  ;;  %1693 = vmatprep.mubr.msk.f32.mxu0 %vm2037_vm0, %v2036_v3  ;;  %v712_v54 = vld [vmem:[%s2902_s3 + $0x30] sm:$0xff] }
  0x44   :  { %1719 = vmatpush3.msra.mxu1 %v2193_v48  ;;  %1694 = vmatmul.mubr.f32.vlgmr.msra.gmra.mxu0 %v2254_v26  ;;  %v2616_v60 = vand.u32 4294901760, %v712_v54 }
  0x45   :  { %1720 = vmatprep.subr.mxu1 %v2036_v3  ;;  %1731 = vmatprep.subr.mxu0 %v2036_v3 }
  0x46   :  { %1721 = vmatpush3.msra.mxu1 %v2219_v59  ;;  %1732 = vmatpush3.msra.mxu0 %v132_v22  ;;  %v2522_v22 = vand.u32 4294901760, %v717_v18 }
  0x47   :  { %1722 = vmatprep.subr.mxu1 %v2036_v3  ;;  %1733 = vmatprep.subr.mxu0 %v2036_v3 }
  0x48   :  { %1723 = vmatpush3.msra.mxu1 %v2231_v63  ;;  %1734 = vmatpush3.msra.mxu0 %v139_v23  ;;  %v2525_v23 = vand.u32 4294901760, %v716_v20  ;;  %v2544_v34 = vsub.f32 %v717_v18, %v2522_v22  ;;  %v2660_v18 = vand.u32 4294901760, %v709_v51 }
  0x49   :  { %1724 = vmatprep.subr.mxu1 %v2036_v3  ;;  %1735 = vmatprep.subr.mxu0 %v2036_v3 }
  0x4a   :  { %1725 = vmatpush3.msra.mxu1 %v2249_v13  ;;  %1736 = vmatpush3.msra.mxu0 %v146_v24  ;;  %v2527_v24 = vand.u32 4294901760, %v715_v21 }
  0x4b   :  { %1726 = vmatprep.subr.mxu1 %v2036_v3  ;;  %1737 = vmatprep.subr.mxu0 %v2036_v3 }
  0x4c   :  { %1727 = vmatpush3.msra.mxu1 %v2261_v32  ;;  %1728 = vmatprep.mubr.msk.f32.mxu1 %vm2037_vm0, %v2036_v3 }
  0x4d   :  { %1738 = vmatpush3.msra.mxu0 %v153_v27  ;;  %1729 = vmatmul.mubr.f32.vlgmr.msra.gmra.mxu1 %v121_v42  ;;  %v713_v42 = vld [vmem:[%s2902_s3 + $0x38] sm:$0xff] }
  0x4e   :  { %1739 = vmatprep.subr.mxu0 %v2036_v3  ;;  %1766 = vmatprep.subr.mxu1 %v2036_v3 }
  0x4f   :  { %1740 = vmatpush3.msra.mxu0 %v160_v29  ;;  %1767 = vmatpush3.msra.mxu1 %v2079_v4  ;;  %v721_v4 = vld [vmem:[%s2902_s3 + $0x78] sm:$0xff] }
  0x50   :  { %1741 = vmatprep.subr.mxu0 %v2036_v3  ;;  %1768 = vmatprep.subr.mxu1 %v2036_v3 }
  0x51   :  { %1742 = vmatpush3.msra.mxu0 %v167_v40  ;;  %1769 = vmatpush3.msra.mxu1 %v2081_v5  ;;  %v2492_v5 = vand.u32 4294901760, %v721_v4  ;;  %v2551_v40 = vsub.f32 %v715_v21, %v2527_v24 }
  0x52   :  { %1743 = vmatprep.subr.mxu0 %v2036_v3  ;;  %1770 = vmatprep.subr.mxu1 %v2036_v3 }
  0x53   :  { %1744 = vmatpush3.msra.mxu0 %v174_v46  ;;  %1771 = vmatpush3.msra.mxu1 %v2083_v6  ;;  %v720_v6 = vld [vmem:[%s2902_s3 + $0x70] sm:$0xff] }
  0x54   :  { %1745 = vmatprep.subr.mxu0 %v2036_v3  ;;  %1772 = vmatprep.subr.mxu1 %v2036_v3  ;;  %v2506_v15 = vand.u32 4294901760, %v720_v6 }
  0x55   :  { %1746 = vmatpush3.msra.mxu0 %v181_v53  ;;  %1773 = vmatpush3.msra.mxu1 %v2095_v10  ;;  %v719_v10 = vld [vmem:[%s2902_s3 + $0x68] sm:$0xff]  ;;  %v851_v53 = vand.u32 4294901760, %v2544_v34 }
  0x56   :  { %1747 = vmatprep.subr.mxu0 %v2036_v3  ;;  %1774 = vmatprep.subr.mxu1 %v2036_v3  ;;  %v2508_v16 = vand.u32 4294901760, %v719_v10 }
  0x57   :  { %1748 = vmatpush3.msra.mxu0 %v188_v57  ;;  %1775 = vmatpush3.msra.mxu1 %v2097_v11  ;;  %v718_v11 = vld [vmem:[%s2902_s3 + $0x60] sm:$0xff] }
  0x58   :  { %1749 = vmatprep.subr.mxu0 %v2036_v3  ;;  %1776 = vmatprep.subr.mxu1 %v2036_v3  ;;  %v2537_v29 = vsub.f32 %v719_v10, %v2508_v16 }
  0x59   :  { %1750 = vmatpush3.msra.mxu0 %v195_v2  ;;  %1777 = vmatpush3.msra.mxu1 %v2099_v12  ;;  %v2504_v12 = vsub.f32 %v721_v4, %v2492_v5 }
  0x5a   :  { %1751 = vmatprep.subr.mxu0 %v2036_v3  ;;  %1778 = vmatprep.subr.mxu1 %v2036_v3  ;;  %v837_v47 = vand.u32 4294901760, %v2537_v29 }
  0x5b   :  { %1752 = vmatpush3.msra.mxu0 %v202_v19  ;;  %1779 = vmatpush3.msra.mxu1 %v2118_v17  ;;  %v2510_v17 = vand.u32 4294901760, %v718_v11  ;;  %v823_v27 = vand.u32 4294901760, %v2504_v12  ;;  %v865_v19 = vand.u32 4294901760, %v2551_v40 }
  0x5c   :  { %1753 = vmatprep.subr.mxu0 %v2036_v3  ;;  %1780 = vmatprep.subr.mxu1 %v2036_v3 }
  0x5d   :  { %1754 = vmatpush3.msra.mxu0 %v209_v37  ;;  %1781 = vmatpush3.msra.mxu1 %v2137_v25  ;;  %v714_v25 = vld [vmem:[%s2902_s3 + $0x40] sm:$0xff]  ;;  %v2540_v30 = vsub.f32 %v718_v11, %v2510_v17  ;;  %v866_v38 = vsub.f32 %v2551_v40, %v865_v19  ;;  %v2656_v11 = vsub.f32 %v710_v33, %v2643_v50 }
  0x5e   :  { %1755 = vmatprep.subr.mxu0 %v2036_v3  ;;  %1782 = vmatprep.subr.mxu1 %v2036_v3  ;;  %v2553_v43 = vand.u32 4294901760, %v714_v25 }
  0x5f   :  { %1756 = vmatpush3.msra.mxu0 %v216_v44  ;;  %1783 = vmatpush3.msra.mxu1 %v2144_v28  ;;  %v2534_v28 = vsub.f32 %v720_v6, %v2506_v15  ;;  %v867_v56 = vand.u32 4294901760, %v866_v38 }
  0x60   :  { %1757 = vmatprep.subr.mxu0 %v2036_v3  ;;  %1784 = vmatprep.subr.mxu1 %v2036_v3  ;;  %v2566_v57 = vsub.f32 %v714_v25, %v2553_v43 }
  0x61   :  { %1758 = vmatpush3.msra.mxu0 %v223_v52  ;;  %1785 = vmatpush3.msra.mxu1 %v2164_v35  ;;  %v2547_v35 = vsub.f32 %v716_v20, %v2525_v23  ;;  %v830_v46 = vand.u32 4294901760, %v2534_v28  ;;  %v2605_v52 = vand.u32 4294901760, %v713_v42  ;;  %v708_v20 = vld [vmem:[%s2902_s3 + $0x10] sm:$0xff] }
  0x62   :  { %1759 = vmatprep.subr.mxu0 %v2036_v3  ;;  %1786 = vmatprep.subr.mxu1 %v2036_v3 }
  0x63   :  { %1760 = vmatpush3.msra.mxu0 %v230_v0  ;;  %1787 = vmatpush3.msra.mxu1 %v2185_v45  ;;  %v824_v45 = vsub.f32 %v2504_v12, %v823_v27  ;;  %v858_v55 = vand.u32 4294901760, %v2547_v35  ;;  %v831_v61 = vsub.f32 %v2534_v28, %v830_v46  ;;  %v2614_v58 = vsub.f32 %v713_v42, %v2605_v52  ;;  %v711_v0 = vld [vmem:[%s2902_s3 + $0x28] sm:$0xff] }
  0x64   :  { %1761 = vmatprep.subr.mxu0 %v2036_v3  ;;  %1788 = vmatprep.subr.mxu1 %v2036_v3  ;;  %v2628_v14 = vand.u32 4294901760, %v711_v0 }
  0x65   :  { %1762 = vmatpush3.msra.mxu0 %v237_v9  ;;  %1763 = vmatprep.mubr.msk.f32.mxu0 %vm2037_vm0, %v2036_v3  ;;  %v832_v2 = vand.u32 4294901760, %v831_v61  ;;  %v859_v31 = vsub.f32 %v2547_v35, %v858_v55  ;;  %v879_v7 = vand.u32 4294901760, %v2614_v58  ;;  %v2626_v9 = vsub.f32 %v712_v54, %v2616_v60 }
  0x66   :  { %1789 = vmatpush3.msra.mxu1 %v2193_v48  ;;  %1764 = vmatmul.mubr.f32.vlgmr.msra.gmra.mxu0 %v2227_v62  ;;  %v844_v48 = vand.u32 4294901760, %v2540_v30  ;;  %v2641_v41 = vsub.f32 %v711_v0, %v2628_v14  ;;  %v2674_v61 = vsub.f32 %v709_v51, %v2660_v18 }
  0x67   :  { %1790 = vmatprep.subr.mxu1 %v2036_v3  ;;  %1798 = vmatprep.mubr.msk.f32.mxu1 %vm2037_vm0, %v2036_v3  ;;  %v860_v44 = vand.u32 4294901760, %v859_v31  ;;  %v880_v36 = vsub.f32 %v2614_v58, %v879_v7  ;;  %v886_v39 = vand.u32 4294901760, %v2626_v9  ;;  %v706_v31 = vld [vmem:[%s2902_s3] sm:$0xff] }
  0x68   :  { %1791 = vmatpush3.msra.mxu1 %v2219_v59  ;;  %1801 = vmatprep.subr.mxu0 %v2036_v3  ;;  %v825_v59 = vand.u32 4294901760, %v824_v45  ;;  %v893_v10 = vand.u32 4294901760, %v2641_v41  ;;  %v900_v45 = vand.u32 4294901760, %v2656_v11 }
  0x69   :  { %1792 = vmatprep.subr.mxu1 %v2036_v3  ;;  %1833 = vmatprep.mubr.msk.f32.mxu0 %vm2037_vm0, %v2036_v3  ;;  %v881_v4 = vand.u32 4294901760, %v880_v36  ;;  %v887_v6 = vsub.f32 %v2626_v9, %v886_v39 }
  0x6a   :  { %1793 = vmatpush3.msra.mxu1 %v2231_v63  ;;  %1802 = vmatpush3.msra.mxu0 %v2492_v5  ;;  %v845_v63 = vsub.f32 %v2540_v30, %v844_v48  ;;  %v894_v25 = vsub.f32 %v2641_v41, %v893_v10 }
  0x6b   :  { %1794 = vmatprep.subr.mxu1 %v2036_v3  ;;  %1803 = vmatprep.subr.mxu0 %v2036_v3  ;;  %v888_v21 = vand.u32 4294901760, %v887_v6 }
  0x6c   :  { %1795 = vmatpush3.msra.mxu1 %v2249_v13  ;;  %1804 = vmatpush3.msra.mxu0 %v2506_v15  ;;  %v852_v13 = vsub.f32 %v2544_v34, %v851_v53  ;;  %v846_v26 = vand.u32 4294901760, %v845_v63  ;;  %v895_v63 = vand.u32 4294901760, %v894_v25 }
  0x6d   :  { %1796 = vmatprep.subr.mxu1 %v2036_v3  ;;  %1805 = vmatprep.subr.mxu0 %v2036_v3 }
  0x6e   :  { %1797 = vmatpush3.msra.mxu1 %v2261_v32  ;;  %1806 = vmatpush3.msra.mxu0 %v2508_v16  ;;  %v872_v32 = vand.u32 4294901760, %v2566_v57  ;;  %v853_v37 = vand.u32 4294901760, %v852_v13 }
  0x6f   :  { %1799 = vmatmul.mubr.f32.vlgmr.msra.gmra.mxu1 %v2227_v62  ;;  %1836 = vmatprep.subr.mxu1 %v2036_v3  ;;  %v838_v62 = vsub.f32 %v2537_v29, %v837_v47 }
  0x70   :  { %1868 = vmatprep.mubr.msk.f32.mxu1 %vm2037_vm0, %v2036_v3  ;;  %1807 = vmatprep.subr.mxu0 %v2036_v3  ;;  %v873_v49 = vsub.f32 %v2566_v57, %v872_v32 }
  0x71   :  { %1808 = vmatpush3.msra.mxu0 %v2510_v17  ;;  %1837 = vmatpush3.msra.mxu1 %v825_v59  ;;  %v839_v8 = vand.u32 4294901760, %v838_v62  ;;  %v2670_v59 = vand.u32 4294901760, %v708_v20  ;;  %v707_v62 = vld [vmem:[%s2902_s3 + $0x8] sm:$0xff] }
  0x72   :  { %1809 = vmatprep.subr.mxu0 %v2036_v3  ;;  %1838 = vmatprep.subr.mxu1 %v2036_v3  ;;  %v874_v1 = vand.u32 4294901760, %v873_v49  ;;  %v2686_v13 = vand.u32 4294901760, %v707_v62 }
  0x73   :  { %1810 = vmatpush3.msra.mxu0 %v2522_v22  ;;  %1839 = vmatpush3.msra.mxu1 %v832_v2  ;;  %v901_v2 = vsub.f32 %v2656_v11, %v900_v45 }
  0x74   :  { %1811 = vmatprep.subr.mxu0 %v2036_v3  ;;  %1840 = vmatprep.subr.mxu1 %v2036_v3  ;;  %v2697_v42 = vsub.f32 %v707_v62, %v2686_v13 }
  0x75   :  { %1812 = vmatpush3.msra.mxu0 %v2525_v23  ;;  %1841 = vmatpush3.msra.mxu1 %v839_v8  ;;  %v2684_v8 = vsub.f32 %v708_v20, %v2670_v59 }
  0x76   :  { %1813 = vmatprep.subr.mxu0 %v2036_v3  ;;  %1842 = vmatprep.subr.mxu1 %v2036_v3 }
  0x77   :  { %1814 = vmatpush3.msra.mxu0 %v2527_v24  ;;  %1843 = vmatpush3.msra.mxu1 %v846_v26  ;;  %v2908_v26 = vand.u32 4294901760, %v2674_v61  ;;  %v2907_v38 = vand.u32 4294901760, %v2684_v8 }
  0x78   :  { %1815 = vmatprep.subr.mxu0 %v2036_v3  ;;  %1844 = vmatprep.subr.mxu1 %v2036_v3 }
  0x79   :  { %1816 = vmatpush3.msra.mxu0 %v2553_v43  ;;  %1845 = vmatpush3.msra.mxu1 %v853_v37  ;;  %v902_v37 = vand.u32 4294901760, %v901_v2  ;;  %v908_v49 = vsub.f32 %v2674_v61, %v2908_v26  ;;  %v915_v54 = vsub.f32 %v2684_v8, %v2907_v38 }
  0x7a   :  { %1817 = vmatprep.subr.mxu0 %v2036_v3  ;;  %1846 = vmatprep.subr.mxu1 %v2036_v3 }
  0x7b   :  { %1818 = vmatpush3.msra.mxu0 %v2605_v52  ;;  %1847 = vmatpush3.msra.mxu1 %v860_v44  ;;  %v2699_v44 = vand.u32 4294901760, %v706_v31  ;;  %v916_v33 = vand.u32 4294901760, %v915_v54 }
  0x7c   :  { %1819 = vmatprep.subr.mxu0 %v2036_v3  ;;  %1848 = vmatprep.subr.mxu1 %v2036_v3 }
  0x7d   :  { %1820 = vmatpush3.msra.mxu0 %v2616_v60  ;;  %1849 = vmatpush3.msra.mxu1 %v867_v56  ;;  %v2906_v56 = vand.u32 4294901760, %v2697_v42  ;;  %v2712_v0 = vsub.f32 %v706_v31, %v2699_v44 }
  0x7e   :  { %1821 = vmatprep.subr.mxu0 %v2036_v3  ;;  %1850 = vmatprep.subr.mxu1 %v2036_v3 }
  0x7f   :  { %1822 = vmatpush3.msra.mxu0 %v2628_v14  ;;  %1851 = vmatpush3.msra.mxu1 %v874_v1  ;;  %v909_v1 = vand.u32 4294901760, %v908_v49  ;;  %v922_v36 = vsub.f32 %v2697_v42, %v2906_v56  ;;  %v2905_v51 = vand.u32 4294901760, %v2712_v0 }
  0x80   :  { %1823 = vmatprep.subr.mxu0 %v2036_v3  ;;  %1852 = vmatprep.subr.mxu1 %v2036_v3 }
  0x81   :  { %1824 = vmatpush3.msra.mxu0 %v2643_v50  ;;  %1853 = vmatpush3.msra.mxu1 %v881_v4  ;;  %v923_v4 = vand.u32 4294901760, %v922_v36  ;;  %v929_v6 = vsub.f32 %v2712_v0, %v2905_v51 }
  0x82   :  { %1825 = vmatprep.subr.mxu0 %v2036_v3  ;;  %1854 = vmatprep.subr.mxu1 %v2036_v3 }
  0x83   :  { %1826 = vmatpush3.msra.mxu0 %v2660_v18  ;;  %1855 = vmatpush3.msra.mxu1 %v888_v21  ;;  %v930_v20 = vand.u32 4294901760, %v929_v6 }
  0x84   :  { %1827 = vmatprep.subr.mxu0 %v2036_v3  ;;  %1856 = vmatprep.subr.mxu1 %v2036_v3 }
  0x85   :  { %1828 = vmatpush3.msra.mxu0 %v2670_v59  ;;  %1857 = vmatpush3.msra.mxu1 %v895_v63 }
  0x86   :  { %1829 = vmatprep.subr.mxu0 %v2036_v3  ;;  %1858 = vmatprep.subr.mxu1 %v2036_v3 }
  0x87   :  { %1830 = vmatpush3.msra.mxu0 %v2686_v13  ;;  %1859 = vmatpush3.msra.mxu1 %v902_v37 }
  0x88   :  { %1831 = vmatprep.subr.mxu0 %v2036_v3  ;;  %1860 = vmatprep.subr.mxu1 %v2036_v3 }
  0x89   :  { %1832 = vmatpush3.msra.mxu0 %v2699_v44  ;;  %1861 = vmatpush3.msra.mxu1 %v909_v1 }
  0x8a   :  { %1871 = vmatprep.subr.mxu0 %v2036_v3  ;;  %1862 = vmatprep.subr.mxu1 %v2036_v3 }
  0x8b   :  { %1863 = vmatpush3.msra.mxu1 %v916_v33 }
  0x8c   :  { %1864 = vmatprep.subr.mxu1 %v2036_v3 }
  0x8d   :  { %1865 = vmatpush3.msra.mxu1 %v923_v4 }
  0x8e   :  { %1866 = vmatprep.subr.mxu1 %v2036_v3 }
  0x8f   :  { %1867 = vmatpush3.msra.mxu1 %v930_v20  ;;  %v1385_v20 = vld [vmem:[%s2901_s2] ss:$0 sm:$0xff] }
  0x90   :  { %1906 = vmatprep.subr.mxu1 %v2036_v3 }
  0xe4   :  { %v125_v21 = vpop.f32.mrf.mxu0 }
  0xe6   :  { %v1625_v25 = vpop.f32.mrf.mxu0 }
  0xeb   :  { %v276_v62 = vpop.f32.mrf.mxu1 }
  0xec   :  { %v277_v1 = vadd.f32 %v276_v62, %v125_v21 }
  0xed   :  { %v1660_v63 = vpop.f32.mrf.mxu1 }
 0x104   :  { %v380_v2 = vpop.f32.mrf.mxu0 }
 0x105   :  { %v381_v36 = vadd.f32 %v380_v2, %v277_v1 }
 0x106   :  { %v1695_v31 = vpop.f32.mrf.mxu0 }
 0x10d   :  { %v469_v37 = vpop.f32.mrf.mxu1 }
 0x10e   :  { %v470_v51 = vadd.f32 %v469_v37, %v381_v36 }
 0x10f   :  { %v1730_v49 = vpop.f32.mrf.mxu1 }
 0x126   :  { %v588_v54 = vpop.f32.mrf.mxu0 }
 0x127   :  { %v589_v6 = vadd.f32 %v588_v54, %v470_v51 }
 0x128   :  { %v1765_v33 = vpop.f32.mrf.mxu0 }
 0x12f   :  { %v675_v4 = vpop.f32.mrf.mxu1 }
 0x130   :  { %v676_v56 = vadd.f32 %v675_v4, %v589_v6 }
 0x131   :  { %v1800_v38 = vpop.f32.mrf.mxu1 }
 0x132   :  { %v702_v25 = vadd.f32 %v1385_v20, %v676_v56 }
 0x134   :  { %v703_v26 = vmax.f32 %v702_v25, 0.0 }
 0x136   :  { %v2732_v63 = vand.u32 4294901760, %v703_v26 }
 0x138   :  { %v2735_v31 = vsub.f32 %v703_v26, %v2732_v63  ;;  %1869 = vmatmul.mubr.f32.vlgmr.msra.gmra.mxu1 %v2732_v63 }
 0x139   :  { %1907 = vmatpush3.msra.mxu1 %v2492_v5  ;;  %1938 = vmatprep.mubr.msk.f32.mxu1 %vm2037_vm0, %v2036_v3 }
 0x13a   :  { %v812_v51 = vand.u32 4294901760, %v2735_v31  ;;  %1908 = vmatprep.subr.mxu1 %v2036_v3 }
 0x13b   :  { %1909 = vmatpush3.msra.mxu1 %v2506_v15 }
 0x13c   :  { %1910 = vmatprep.subr.mxu1 %v2036_v3  ;;  %v813_v38 = vsub.f32 %v2735_v31, %v812_v51 }
 0x13d   :  { %1911 = vmatpush3.msra.mxu1 %v2508_v16 }
 0x13e   :  { %1912 = vmatprep.subr.mxu1 %v2036_v3  ;;  %v814_v26 = vand.u32 4294901760, %v813_v38 }
 0x13f   :  { %1913 = vmatpush3.msra.mxu1 %v2510_v17 }
 0x140   :  { %1914 = vmatprep.subr.mxu1 %v2036_v3  ;;  %1834 = vmatmul.mubr.f32.vlgmr.msra.gmra.mxu0 %v814_v26 }
 0x141   :  { %1872 = vmatpush3.msra.mxu0 %v2504_v12  ;;  %1915 = vmatpush3.msra.mxu1 %v2522_v22  ;;  %v2910_v12 = vand.u32 4294901760, %v2684_v8 }
 0x142   :  { %1873 = vmatprep.subr.mxu0 %v2036_v3  ;;  %1916 = vmatprep.subr.mxu1 %v2036_v3 }
 0x143   :  { %1874 = vmatpush3.msra.mxu0 %v2534_v28  ;;  %1917 = vmatpush3.msra.mxu1 %v2525_v23 }
 0x144   :  { %1875 = vmatprep.subr.mxu0 %v2036_v3  ;;  %1918 = vmatprep.subr.mxu1 %v2036_v3 }
 0x145   :  { %1876 = vmatpush3.msra.mxu0 %v2537_v29  ;;  %1919 = vmatpush3.msra.mxu1 %v2527_v24 }
 0x146   :  { %1877 = vmatprep.subr.mxu0 %v2036_v3  ;;  %1920 = vmatprep.subr.mxu1 %v2036_v3 }
 0x147   :  { %1878 = vmatpush3.msra.mxu0 %v2540_v30  ;;  %1921 = vmatpush3.msra.mxu1 %v2553_v43 }
 0x148   :  { %1879 = vmatprep.subr.mxu0 %v2036_v3  ;;  %1922 = vmatprep.subr.mxu1 %v2036_v3 }
 0x149   :  { %1880 = vmatpush3.msra.mxu0 %v2544_v34  ;;  %1923 = vmatpush3.msra.mxu1 %v2605_v52  ;;  %v1386_v34 = vld [vmem:[%s2903_s4] ss:$0 sm:$0xff] }
 0x14a   :  { %1881 = vmatprep.subr.mxu0 %v2036_v3  ;;  %1924 = vmatprep.subr.mxu1 %v2036_v3 }
 0x14b   :  { %1882 = vmatpush3.msra.mxu0 %v2547_v35  ;;  %1925 = vmatpush3.msra.mxu1 %v2616_v60 }
 0x14c   :  { %1883 = vmatprep.subr.mxu0 %v2036_v3  ;;  %1926 = vmatprep.subr.mxu1 %v2036_v3 }
 0x14d   :  { %1884 = vmatpush3.msra.mxu0 %v2551_v40  ;;  %1927 = vmatpush3.msra.mxu1 %v2628_v14 }
 0x14e   :  { %1885 = vmatprep.subr.mxu0 %v2036_v3  ;;  %1928 = vmatprep.subr.mxu1 %v2036_v3 }
 0x14f   :  { %1886 = vmatpush3.msra.mxu0 %v2566_v57  ;;  %1929 = vmatpush3.msra.mxu1 %v2643_v50 }
 0x150   :  { %1887 = vmatprep.subr.mxu0 %v2036_v3  ;;  %1930 = vmatprep.subr.mxu1 %v2036_v3 }
 0x151   :  { %1888 = vmatpush3.msra.mxu0 %v2614_v58  ;;  %1931 = vmatpush3.msra.mxu1 %v2660_v18 }
 0x152   :  { %1889 = vmatprep.subr.mxu0 %v2036_v3  ;;  %1932 = vmatprep.subr.mxu1 %v2036_v3 }
 0x153   :  { %1890 = vmatpush3.msra.mxu0 %v2626_v9  ;;  %1933 = vmatpush3.msra.mxu1 %v2670_v59 }
 0x154   :  { %1891 = vmatprep.subr.mxu0 %v2036_v3  ;;  %1934 = vmatprep.subr.mxu1 %v2036_v3 }
 0x155   :  { %1892 = vmatpush3.msra.mxu0 %v2641_v41  ;;  %1935 = vmatpush3.msra.mxu1 %v2686_v13 }
 0x156   :  { %1893 = vmatprep.subr.mxu0 %v2036_v3  ;;  %1936 = vmatprep.subr.mxu1 %v2036_v3 }
 0x157   :  { %1894 = vmatpush3.msra.mxu0 %v2656_v11  ;;  %1937 = vmatpush3.msra.mxu1 %v2699_v44 }
 0x158   :  { %1895 = vmatprep.subr.mxu0 %v2036_v3  ;;  %1939 = vmatmul.mubr.f32.vlgmr.msra.gmra.mxu1 %v812_v51 }
 0x159   :  { %1976 = vmatprep.subr.mxu1 %v2036_v3  ;;  %1896 = vmatpush3.msra.mxu0 %v2674_v61 }
 0x15a   :  { %1977 = vmatpush3.msra.mxu1 %v2492_v5  ;;  %1897 = vmatprep.subr.mxu0 %v2036_v3  ;;  %v2909_v5 = vand.u32 4294901760, %v2674_v61 }
 0x15b   :  { %1978 = vmatprep.subr.mxu1 %v2036_v3  ;;  %1898 = vmatpush3.msra.mxu0 %v2684_v8 }
 0x15c   :  { %1979 = vmatpush3.msra.mxu1 %v2506_v15  ;;  %1899 = vmatprep.subr.mxu0 %v2036_v3  ;;  %v2911_v15 = vand.u32 4294901760, %v2697_v42 }
 0x15d   :  { %1980 = vmatprep.subr.mxu1 %v2036_v3  ;;  %1900 = vmatpush3.msra.mxu0 %v2697_v42 }
 0x15e   :  { %1981 = vmatpush3.msra.mxu1 %v2508_v16  ;;  %1901 = vmatprep.subr.mxu0 %v2036_v3  ;;  %v2912_v16 = vand.u32 4294901760, %v2712_v0 }
 0x15f   :  { %1982 = vmatprep.subr.mxu1 %v2036_v3  ;;  %1902 = vmatpush3.msra.mxu0 %v2712_v0 }
 0x160   :  { %1903 = vmatprep.mubr.msk.f32.mxu0 %vm2037_vm0, %v2036_v3  ;;  %1983 = vmatpush3.msra.mxu1 %v2510_v17 }
 0x161   :  { %1904 = vmatmul.mubr.f32.vlgmr.msra.gmra.mxu0 %v2735_v31  ;;  %1941 = vmatprep.subr.mxu0 %v2036_v3 }
 0x162   :  { %1984 = vmatprep.subr.mxu1 %v2036_v3  ;;  %1942 = vmatpush3.msra.mxu0 %v823_v27 }
 0x163   :  { %1985 = vmatpush3.msra.mxu1 %v2522_v22  ;;  %1943 = vmatprep.subr.mxu0 %v2036_v3 }
 0x164   :  { %1986 = vmatprep.subr.mxu1 %v2036_v3  ;;  %1944 = vmatpush3.msra.mxu0 %v830_v46 }
 0x165   :  { %1987 = vmatpush3.msra.mxu1 %v2525_v23  ;;  %1945 = vmatprep.subr.mxu0 %v2036_v3 }
 0x166   :  { %1988 = vmatprep.subr.mxu1 %v2036_v3  ;;  %1946 = vmatpush3.msra.mxu0 %v837_v47 }
 0x167   :  { %1989 = vmatpush3.msra.mxu1 %v2527_v24  ;;  %1947 = vmatprep.subr.mxu0 %v2036_v3 }
 0x168   :  { %1990 = vmatprep.subr.mxu1 %v2036_v3  ;;  %1948 = vmatpush3.msra.mxu0 %v844_v48 }
 0x169   :  { %1991 = vmatpush3.msra.mxu1 %v2553_v43  ;;  %1949 = vmatprep.subr.mxu0 %v2036_v3 }
 0x16a   :  { %1992 = vmatprep.subr.mxu1 %v2036_v3  ;;  %1950 = vmatpush3.msra.mxu0 %v851_v53 }
 0x16b   :  { %1993 = vmatpush3.msra.mxu1 %v2605_v52  ;;  %1951 = vmatprep.subr.mxu0 %v2036_v3 }
 0x16c   :  { %1994 = vmatprep.subr.mxu1 %v2036_v3  ;;  %1952 = vmatpush3.msra.mxu0 %v858_v55 }
 0x16d   :  { %1995 = vmatpush3.msra.mxu1 %v2616_v60  ;;  %1953 = vmatprep.subr.mxu0 %v2036_v3 }
 0x16e   :  { %1996 = vmatprep.subr.mxu1 %v2036_v3  ;;  %1954 = vmatpush3.msra.mxu0 %v865_v19 }
 0x16f   :  { %1997 = vmatpush3.msra.mxu1 %v2628_v14  ;;  %1955 = vmatprep.subr.mxu0 %v2036_v3 }
 0x170   :  { %1998 = vmatprep.subr.mxu1 %v2036_v3  ;;  %1956 = vmatpush3.msra.mxu0 %v872_v32 }
 0x171   :  { %1999 = vmatpush3.msra.mxu1 %v2643_v50  ;;  %1957 = vmatprep.subr.mxu0 %v2036_v3 }
 0x172   :  { %2000 = vmatprep.subr.mxu1 %v2036_v3  ;;  %1958 = vmatpush3.msra.mxu0 %v879_v7 }
 0x173   :  { %2001 = vmatpush3.msra.mxu1 %v2660_v18  ;;  %1959 = vmatprep.subr.mxu0 %v2036_v3 }
 0x174   :  { %2002 = vmatprep.subr.mxu1 %v2036_v3  ;;  %1960 = vmatpush3.msra.mxu0 %v886_v39 }
 0x175   :  { %2003 = vmatpush3.msra.mxu1 %v2670_v59  ;;  %1961 = vmatprep.subr.mxu0 %v2036_v3 }
 0x176   :  { %2004 = vmatprep.subr.mxu1 %v2036_v3  ;;  %1962 = vmatpush3.msra.mxu0 %v893_v10 }
 0x177   :  { %2005 = vmatpush3.msra.mxu1 %v2686_v13  ;;  %1963 = vmatprep.subr.mxu0 %v2036_v3 }
 0x178   :  { %2006 = vmatprep.subr.mxu1 %v2036_v3  ;;  %1964 = vmatpush3.msra.mxu0 %v900_v45 }
 0x179   :  { %2007 = vmatpush3.msra.mxu1 %v2699_v44  ;;  %2008 = vmatprep.mubr.msk.f32.mxu1 %vm2037_vm0, %v2036_v3 }
 0x17a   :  { %1965 = vmatprep.subr.mxu0 %v2036_v3  ;;  %2009 = vmatmul.mubr.f32.vlgmr.msra.gmra.mxu1 %v2732_v63 }
 0x17b   :  { %1966 = vmatpush3.msra.mxu0 %v2909_v5  ;;  %1973 = vmatprep.mubr.msk.f32.mxu0 %vm2037_vm0, %v2036_v3 }
 0x17c   :  { %1967 = vmatprep.subr.mxu0 %v2036_v3 }
 0x17d   :  { %1968 = vmatpush3.msra.mxu0 %v2910_v12 }
 0x17e   :  { %1969 = vmatprep.subr.mxu0 %v2036_v3 }
 0x17f   :  { %1970 = vmatpush3.msra.mxu0 %v2911_v15 }
 0x180   :  { %1971 = vmatprep.subr.mxu0 %v2036_v3 }
 0x181   :  { %1972 = vmatpush3.msra.mxu0 %v2912_v16 }
 0x182   :  { %1974 = vmatmul.mubr.f32.vlgmr.msra.gmra.mxu0 %v2732_v63 }
 0x1f8   :  { %v967_v17 = vpop.f32.mrf.mxu1 }
 0x1fa   :  { %v1870_v22 = vpop.f32.mrf.mxu1 }
 0x200   :  { %v816_v23 = vpop.f32.mrf.mxu0 }
 0x201   :  { %v817_v35 = vadd.f32 %v1386_v34, %v816_v23 }
 0x202   :  { %v1835_v24 = vpop.f32.mrf.mxu0 }
 0x203   :  { %v968_v3 = vadd.f32 %v967_v17, %v817_v35 }
 0x218   :  { %v1160_v27 = vpop.f32.mrf.mxu1 }
 0x21a   :  { %v1940_v28 = vpop.f32.mrf.mxu1 }
 0x221   :  { %v1071_v29 = vpop.f32.mrf.mxu0 }
 0x222   :  { %v1072_v46 = vadd.f32 %v1071_v29, %v968_v3 }
 0x223   :  { %v1905_v30 = vpop.f32.mrf.mxu0 }
 0x224   :  { %v1161_v47 = vadd.f32 %v1160_v27, %v1072_v46 }
 0x23a   :  { %v1366_v40 = vpop.f32.mrf.mxu1 }
 0x23c   :  { %v2010_v43 = vpop.f32.mrf.mxu1 }
 0x242   :  { %v1279_v48 = vpop.f32.mrf.mxu0 }
 0x243   :  { %v1280_v53 = vadd.f32 %v1279_v48, %v1161_v47 }
 0x244   :  { %v1975_v55 = vpop.f32.mrf.mxu0 }
 0x245   :  { %v1367_v57 = vadd.f32 %v1366_v40, %v1280_v53 }
 0x247   :  { %1370 = vst [vmem:[#allocation3] sm:$0xff] %v1367_v57 }
 0x248   :  { %2025 = shalt.err (!%p2022_p4)
}
 0x249   :  { %1380 = dma.vmem_to_hbm [thread:$0]  %s1378_s8, 128, %s2904_s5, [#allocation4]  }
 0x24a   :  { %2034 = dma.done.wait [#allocation4], 128  }
 0x24b   :  { %2035 = vsyncadd [#allocation4], 4294967168 }
 0x24c   :  { %1384 = vsyncpa [#allocation4], 1 }

</bundles_post_ra>
